<compile_context>
chip_gen: v7x
topology: tpu7x:2x2x1
jax: 0.10.0
libtpu: 0.0.40
codegen_flags: <defaults>
</compile_context>

<pallas_src>
import functools

import jax
import jax.numpy as jnp
from jax.experimental import pallas as pl
from jax.experimental.pallas import tpu as pltpu


def _round_up(x: int, m: int) -> int:
    return (x + m - 1) // m * m


def _auto_rows_per_tile(n_rows: int, d: int, target_bytes: int = 2 * 1024 * 1024) -> int:
    """Pick a token-tile row count giving ~target_bytes per f32 pix tile."""
    rows = max(8, (target_bytes // (d * 4)) // 8 * 8)
    rows = min(rows, _round_up(max(n_rows, 1), 8))
    return int(rows)


def _masked_aligator_mse_kernel(pix_pred_ref, pix_target_ref, pix_mask_ref,
                                imu_pred_ref, imu_mask_ref, out_ref,
                                num_acc, den_acc,
                                *, norm_pix_loss: bool, inv_dp: float, inv_di: float):
    i = pl.program_id(0)

    @pl.when(i == 0)
    def _init():
        num_acc[...] = jnp.zeros_like(num_acc)
        den_acc[...] = jnp.zeros_like(den_acc)

    pred = pix_pred_ref[...].astype(jnp.float32)    # (TR, Dp)
    tgt = pix_target_ref[...].astype(jnp.float32)   # (TR, Dp)
    mask = pix_mask_ref[...].astype(jnp.float32)    # (TR, 1) -- 0 for padded rows

    if norm_pix_loss:
        # torch.var(dim=-1) defaults to the unbiased estimator (ddof=1).
        d = tgt.shape[-1]
        mean = jnp.mean(tgt, axis=-1, keepdims=True)
        centered = tgt - mean
        var = jnp.sum(centered * centered, axis=-1, keepdims=True) / max(d - 1, 1)
        tgt = centered * jax.lax.rsqrt(var + 1e-6)

    # TODO(synk): the reference forward unconditionally reads self.norm_imu_loss and
    # imu_target, neither of which exists in __init__/signature (would raise at
    # runtime in PyTorch); that branch is omitted here.

    # sum_{rows,D}(mask[row] * diff^2) * (1/Dp) == sum_rows mask[row]*mean_D(diff^2)
    # -> a single full-tile 2-D reduce instead of a per-row cross-lane reduce.
    diff = pred - tgt
    num_acc[...] += jnp.sum(diff * diff * mask, axis=(0, 1), keepdims=True) * inv_dp
    den_acc[...] += jnp.sum(mask, axis=(0, 1), keepdims=True)

    @pl.when(i == pl.num_programs(0) - 1)
    def _finalize():
        # imu arrays are transposed: (Di, Ni_pad); tokens sit on the lane axis.
        imu_pred = imu_pred_ref[...].astype(jnp.float32)
        imu_mask = imu_mask_ref[...].astype(jnp.float32)
        idiff = imu_pred * imu_mask - imu_pred
        imu_loss = jnp.sum(idiff * idiff, axis=0, keepdims=True) * inv_di  # (1, Ni_pad)

        # Single scalar divide per call; an all-zero pix_mask yields inf/nan exactly
        # like the PyTorch reference.
        pix_scalar = num_acc[...] * pl.reciprocal(den_acc[...], approx=False)  # (1, 1)
        out_ref[...] = pix_scalar + imu_loss   # lane-dense (1, Ni_pad) store


def masked_aligator_mse(pix_pred, pix_mask, pix_target, imu_pred, imu_mask,
                        *, norm_pix_loss: bool = False, pix_masked: bool = True,
                        rows_per_tile: int | None = None):
    B, Lp, Dp = pix_pred.shape
    Bi, Li, Di = imu_pred.shape
    assert Bi == B, (Bi, B)

    Np = B * Lp
    Ni = B * Li

    if rows_per_tile is None:
        rows_per_tile = _auto_rows_per_tile(Np, Dp)
    rows_per_tile = max(8, (rows_per_tile // 8) * 8)
    Np_pad = _round_up(Np, rows_per_tile)
    num_tiles = Np_pad // rows_per_tile
    Ni_pad = _round_up(Ni, 128)

    f32 = jnp.float32

    # ---- pix side: flatten token axes; zero-pad rows (padded rows have mask 0,
    #      zero pred/target -> contribute 0 to both numerator and denominator). ----
    pix_pred2 = jnp.pad(pix_pred.reshape(Np, Dp), ((0, Np_pad - Np), (0, 0)))
    pix_tgt2 = jnp.pad(pix_target.reshape(Np, Dp), ((0, Np_pad - Np), (0, 0)))
    if pix_masked:
        eff_mask = pix_mask.reshape(Np, 1).astype(f32)
    else:
        # Plain mean == masked mean with an all-ones mask over the real rows.
        eff_mask = jnp.ones((Np, 1), f32)
    eff_mask = jnp.pad(eff_mask, ((0, Np_pad - Np), (0, 0)))

    # ---- imu side: transpose so tokens land on the 128-lane axis (sublane reduce,
    #      lane-dense output); pad tokens to a multiple of 128. imu arrays are small
    #      so the wrapper transpose is negligible HBM traffic. ----
    # TODO(synk): if imu_mask is semantically per-token, passing it as [B, Li] and
    # broadcasting in-kernel would halve imu-side HBM bytes; kept element-wise here
    # to match the general PyTorch broadcast exactly.
    imu_pred_t = jnp.pad(imu_pred.reshape(Ni, Di).T, ((0, 0), (0, Ni_pad - Ni)))
    imu_mask_t = jnp.pad(imu_mask.reshape(Ni, Di).T, ((0, 0), (0, Ni_pad - Ni)))

    kernel = functools.partial(
        _masked_aligator_mse_kernel,
        norm_pix_loss=norm_pix_loss,
        inv_dp=1.0 / Dp,
        inv_di=1.0 / Di,
    )

    grid_spec = pltpu.PrefetchScalarGridSpec(
        num_scalar_prefetch=0,
        grid=(num_tiles,),
        in_specs=[
            pl.BlockSpec((rows_per_tile, Dp), lambda i: (i, 0)),   # pix_pred
            pl.BlockSpec((rows_per_tile, Dp), lambda i: (i, 0)),   # pix_target
            pl.BlockSpec((rows_per_tile, 1), lambda i: (i, 0)),    # eff pix mask
            pl.BlockSpec((Di, Ni_pad), lambda i: (0, 0)),          # imu_pred (resident)
            pl.BlockSpec((Di, Ni_pad), lambda i: (0, 0)),          # imu_mask (resident)
        ],
        out_specs=pl.BlockSpec((1, Ni_pad), lambda i: (0, 0)),     # lane-dense loss slab
        scratch_shapes=[pltpu.VMEM((1, 1), jnp.float32),           # sum(pix_loss * mask)
                        pltpu.VMEM((1, 1), jnp.float32)],          # sum(mask)
    )

    bytes_accessed = int(
        pix_pred2.size * pix_pred2.dtype.itemsize
        + pix_tgt2.size * pix_tgt2.dtype.itemsize
        + eff_mask.size * eff_mask.dtype.itemsize
        + imu_pred_t.size * imu_pred_t.dtype.itemsize
        + imu_mask_t.size * imu_mask_t.dtype.itemsize
        + Ni_pad * 4
    )
    flops = int(Np_pad * Dp * (4 + (6 if norm_pix_loss else 0)) + Di * Ni_pad * 4)
    transcendentals = int(Np_pad if norm_pix_loss else 0)
    cost = pl.CostEstimate(flops=flops, transcendentals=transcendentals,
                           bytes_accessed=bytes_accessed)

    out = pl.pallas_call(
        kernel,
        out_shape=jax.ShapeDtypeStruct((1, Ni_pad), jnp.float32),
        grid_spec=grid_spec,
        compiler_params=pltpu.CompilerParams(
            # Single grid axis carries the global pix reduction -> "arbitrary".
            dimension_semantics=("arbitrary",),
            # ~2 MiB pix tiles x 2 inputs x 2 buffers ~ 8 MiB; 32 MiB is safe on
            # v5e/v6e (128 MiB phys) and v7x (64 MiB phys / 32 MiB scoped default).
            vmem_limit_bytes=32 * 1024 * 1024,
        ),
        cost_estimate=cost,
    )(pix_pred2, pix_tgt2, eff_mask, imu_pred_t, imu_mask_t)

    return out[0, :Ni].reshape(B, Li)


def _reference(pix_pred, pix_mask, pix_target, imu_pred, imu_mask,
               norm_pix_loss=False, pix_masked=True):
    pix_pred = pix_pred.astype(jnp.float32)
    pix_target = pix_target.astype(jnp.float32)
    if norm_pix_loss:
        mean = pix_target.mean(axis=-1, keepdims=True)
        var = pix_target.var(axis=-1, keepdims=True, ddof=1)
        pix_target = (pix_target - mean) / (var + 1e-6) ** 0.5
    pix_loss = ((pix_pred - pix_target) ** 2).mean(axis=-1)
    if pix_masked:
        pix_loss = (pix_loss * pix_mask).sum() / pix_mask.sum()
    else:
        pix_loss = pix_loss.mean()
    imu_loss = ((imu_pred * imu_mask - imu_pred) ** 2).mean(axis=-1)
    return pix_loss + imu_loss


if __name__ == "__main__":
    B, Lp, Dp = 2, 8, 32   # pixel patches
    Li, Di = 8, 16         # imu tokens

    key = jax.random.PRNGKey(0)
    k1, k2, k3, k4, k5 = jax.random.split(key, 5)

    pix_pred = jax.random.normal(k1, (B, Lp, Dp), dtype=jnp.float32)
    pix_target = jax.random.normal(k2, (B, Lp, Dp), dtype=jnp.float32)
    pix_mask = (jax.random.uniform(k3, (B, Lp)) > 0.5).astype(jnp.float32)
    imu_pred = jax.random.normal(k4, (B, Li, Di), dtype=jnp.float32)
    imu_mask = (jax.random.uniform(k5, (B, Li, Di)) > 0.5).astype(jnp.float32)

    for norm_pix_loss, pix_masked in [(False, True), (True, False)]:
        out = masked_aligator_mse(
            pix_pred, pix_mask, pix_target, imu_pred, imu_mask,
            norm_pix_loss=norm_pix_loss, pix_masked=pix_masked,
            rows_per_tile=8)   # force a multi-step grid at this small test size
        out = jax.block_until_ready(out)

        ref = _reference(pix_pred, pix_mask, pix_target, imu_pred, imu_mask,
                         norm_pix_loss=norm_pix_loss, pix_masked=pix_masked)
        assert out.shape == (B, Li), out.shape
        assert jnp.allclose(out, ref, atol=1e-5, rtol=1e-5), (
            norm_pix_loss, pix_masked, out, ref)

    print("KERNEL_OK")
</pallas_src>

<mosaic_0001>
module attributes {stable_mosaic.version = 11 : i64} {
  func.func @_masked_aligator_mse_kernel(%arg0: i32, %arg1: memref<8x32xf32, #tpu.memory_space<vmem>>, %arg2: memref<8x32xf32, #tpu.memory_space<vmem>>, %arg3: memref<8x1xf32, #tpu.memory_space<vmem>>, %arg4: memref<16x128xf32, #tpu.memory_space<vmem>>, %arg5: memref<16x128xf32, #tpu.memory_space<vmem>>, %arg6: memref<1x128xf32, #tpu.memory_space<vmem>>, %arg7: memref<1x1xf32, #tpu.memory_space<vmem>>, %arg8: memref<1x1xf32, #tpu.memory_space<vmem>>) attributes {dimension_semantics = [#tpu.dimension_semantics<arbitrary>], iteration_bounds = array<i64: 2>, scalar_prefetch = 0 : i64, scratch_operands = 2 : i64, tpu.core_type = #tpu.core_type<tc>, window_params = [{transform_indices = @transform_0, window_bounds = array<i64: 8, 32>}, {transform_indices = @transform_1, window_bounds = array<i64: 8, 32>}, {transform_indices = @transform_2, window_bounds = array<i64: 8, 1>}, {pipeline_mode = #tpu.pipeline_mode<synchronous>, transform_indices = @transform_3, window_bounds = array<i64: 16, 128>}, {pipeline_mode = #tpu.pipeline_mode<synchronous>, transform_indices = @transform_4, window_bounds = array<i64: 16, 128>}, {pipeline_mode = #tpu.pipeline_mode<synchronous>, transform_indices = @transform_5, window_bounds = array<i64: 1, 128>}]} {
    %c0_i32 = arith.constant 0 : i32
    %0 = arith.cmpi eq, %arg0, %c0_i32 : i32
    %1 = arith.extui %0 : i1 to i32
    %c0_i32_0 = arith.constant 0 : i32
    %2 = arith.cmpi ne, %1, %c0_i32_0 : i32
    scf.if %2 {
      %cst_17 = arith.constant 0.000000e+00 : f32
      %31 = vector.broadcast %cst_17 : f32 to vector<1x1xf32>
      %c0_18 = arith.constant 0 : index
      %c0_19 = arith.constant 0 : index
      %32 = vector.load %arg7[%c0_18, %c0_19] : memref<1x1xf32, #tpu.memory_space<vmem>>, vector<1x1xf32>
      tpu.vector_store %arg7[%c0_18, %c0_19], %31 {strides = array<i32>} : memref<1x1xf32, #tpu.memory_space<vmem>>, vector<1x1xf32>,
      %cst_20 = arith.constant 0.000000e+00 : f32
      %33 = vector.broadcast %cst_20 : f32 to vector<1x1xf32>
      %c0_21 = arith.constant 0 : index
      %c0_22 = arith.constant 0 : index
      %34 = vector.load %arg8[%c0_21, %c0_22] : memref<1x1xf32, #tpu.memory_space<vmem>>, vector<1x1xf32>
      tpu.vector_store %arg8[%c0_21, %c0_22], %33 {strides = array<i32>} : memref<1x1xf32, #tpu.memory_space<vmem>>, vector<1x1xf32>,
    } else {
    }
    %c0 = arith.constant 0 : index
    %c0_1 = arith.constant 0 : index
    %3 = vector.load %arg1[%c0, %c0_1] : memref<8x32xf32, #tpu.memory_space<vmem>>, vector<8x32xf32>
    %c0_2 = arith.constant 0 : index
    %c0_3 = arith.constant 0 : index
    %4 = vector.load %arg2[%c0_2, %c0_3] : memref<8x32xf32, #tpu.memory_space<vmem>>, vector<8x32xf32>
    %c0_4 = arith.constant 0 : index
    %c0_5 = arith.constant 0 : index
    %5 = vector.load %arg3[%c0_4, %c0_5] : memref<8x1xf32, #tpu.memory_space<vmem>>, vector<8x1xf32>
    %6 = arith.subf %3, %4 : vector<8x32xf32>
    %c0_6 = arith.constant 0 : index
    %c0_7 = arith.constant 0 : index
    %7 = vector.load %arg7[%c0_6, %c0_7] : memref<1x1xf32, #tpu.memory_space<vmem>>, vector<1x1xf32>
    %8 = arith.mulf %6, %6 : vector<8x32xf32>
    %9 = vector.broadcast %5 : vector<8x1xf32> to vector<8x32xf32>
    %10 = arith.mulf %8, %9 : vector<8x32xf32>
    %11 = vector.shape_cast %10 : vector<8x32xf32> to vector<1x8x32xf32>
    %cst = arith.constant dense<0.000000e+00> : vector<1xf32>
    %12 = vector.multi_reduction <add>, %11, %cst [1, 2] : vector<1x8x32xf32> to vector<1xf32>
    %13 = vector.shape_cast %12 : vector<1xf32> to vector<1x1x1xf32>
    %14 = vector.extract %13[0, 0, 0] : f32 from vector<1x1x1xf32>
    %15 = vector.broadcast %14 : f32 to vector<1x1xf32>
    %cst_8 = arith.constant 3.125000e-02 : f32
    %16 = vector.broadcast %cst_8 : f32 to vector<1x1xf32>
    %17 = arith.mulf %15, %16 : vector<1x1xf32>
    %18 = arith.addf %7, %17 : vector<1x1xf32>
    %c0_9 = arith.constant 0 : index
    %c0_10 = arith.constant 0 : index
    %19 = vector.load %arg7[%c0_9, %c0_10] : memref<1x1xf32, #tpu.memory_space<vmem>>, vector<1x1xf32>
    tpu.vector_store %arg7[%c0_9, %c0_10], %18 {strides = array<i32>} : memref<1x1xf32, #tpu.memory_space<vmem>>, vector<1x1xf32>,
    %c0_11 = arith.constant 0 : index
    %c0_12 = arith.constant 0 : index
    %20 = vector.load %arg8[%c0_11, %c0_12] : memref<1x1xf32, #tpu.memory_space<vmem>>, vector<1x1xf32>
    %21 = vector.shape_cast %5 : vector<8x1xf32> to vector<1x8x1xf32>
    %cst_13 = arith.constant dense<0.000000e+00> : vector<1xf32>
    %22 = vector.multi_reduction <add>, %21, %cst_13 [1, 2] : vector<1x8x1xf32> to vector<1xf32>
    %23 = vector.shape_cast %22 : vector<1xf32> to vector<1x1x1xf32>
    %24 = vector.extract %23[0, 0, 0] : f32 from vector<1x1x1xf32>
    %25 = vector.broadcast %24 : f32 to vector<1x1xf32>
    %26 = arith.addf %20, %25 : vector<1x1xf32>
    %c0_14 = arith.constant 0 : index
    %c0_15 = arith.constant 0 : index
    %27 = vector.load %arg8[%c0_14, %c0_15] : memref<1x1xf32, #tpu.memory_space<vmem>>, vector<1x1xf32>
    tpu.vector_store %arg8[%c0_14, %c0_15], %26 {strides = array<i32>} : memref<1x1xf32, #tpu.memory_space<vmem>>, vector<1x1xf32>,
    %c1_i32 = arith.constant 1 : i32
    %28 = arith.cmpi eq, %arg0, %c1_i32 : i32
    %29 = arith.extui %28 : i1 to i32
    %c0_i32_16 = arith.constant 0 : i32
    %30 = arith.cmpi ne, %29, %c0_i32_16 : i32
    scf.if %30 {
      %c0_17 = arith.constant 0 : index
      %c0_18 = arith.constant 0 : index
      %31 = vector.load %arg4[%c0_17, %c0_18] : memref<16x128xf32, #tpu.memory_space<vmem>>, vector<16x128xf32>
      %c0_19 = arith.constant 0 : index
      %c0_20 = arith.constant 0 : index
      %32 = vector.load %arg5[%c0_19, %c0_20] : memref<16x128xf32, #tpu.memory_space<vmem>>, vector<16x128xf32>
      %33 = arith.mulf %31, %32 : vector<16x128xf32>
      %34 = arith.subf %33, %31 : vector<16x128xf32>
      %35 = arith.mulf %34, %34 : vector<16x128xf32>
      %cst_21 = arith.constant dense<0.000000e+00> : vector<128xf32>
      %36 = vector.multi_reduction <add>, %35, %cst_21 [0] : vector<16x128xf32> to vector<128xf32>
      %37 = vector.shape_cast %36 : vector<128xf32> to vector<1x128xf32>
      %cst_22 = arith.constant 6.250000e-02 : f32
      %38 = vector.broadcast %cst_22 : f32 to vector<1x128xf32>
      %39 = arith.mulf %37, %38 : vector<1x128xf32>
      %c0_23 = arith.constant 0 : index
      %c0_24 = arith.constant 0 : index
      %40 = vector.load %arg7[%c0_23, %c0_24] : memref<1x1xf32, #tpu.memory_space<vmem>>, vector<1x1xf32>
      %c0_25 = arith.constant 0 : index
      %c0_26 = arith.constant 0 : index
      %41 = vector.load %arg8[%c0_25, %c0_26] : memref<1x1xf32, #tpu.memory_space<vmem>>, vector<1x1xf32>
      %42 = tpu.reciprocal %41 : vector<1x1xf32> -> vector<1x1xf32>
      %43 = arith.mulf %40, %42 : vector<1x1xf32>
      %44 = vector.broadcast %43 : vector<1x1xf32> to vector<1x128xf32>
      %45 = arith.addf %44, %39 : vector<1x128xf32>
      %c0_27 = arith.constant 0 : index
      %c0_28 = arith.constant 0 : index
      %46 = vector.load %arg6[%c0_27, %c0_28] : memref<1x128xf32, #tpu.memory_space<vmem>>, vector<1x128xf32>
      tpu.vector_store %arg6[%c0_27, %c0_28], %45 {strides = array<i32>} : memref<1x128xf32, #tpu.memory_space<vmem>>, vector<1x128xf32>,
    } else {
    }
    return
  }
  func.func @transform_0(%arg0: i32) -> (i32, i32) {
    %c0_i32 = arith.constant 0 : i32
    %c0_i32_0 = arith.constant 0 : i32
    return %arg0, %c0_i32 : i32, i32
  }
  func.func @transform_1(%arg0: i32) -> (i32, i32) {
    %c0_i32 = arith.constant 0 : i32
    %c0_i32_0 = arith.constant 0 : i32
    return %arg0, %c0_i32 : i32, i32
  }
  func.func @transform_2(%arg0: i32) -> (i32, i32) {
    %c0_i32 = arith.constant 0 : i32
    %c0_i32_0 = arith.constant 0 : i32
    return %arg0, %c0_i32 : i32, i32
  }
  func.func @transform_3(%arg0: i32) -> (i32, i32) {
    %c0_i32 = arith.constant 0 : i32
    %c0_i32_0 = arith.constant 0 : i32
    %c0_i32_1 = arith.constant 0 : i32
    return %c0_i32, %c0_i32_0 : i32, i32
  }
  func.func @transform_4(%arg0: i32) -> (i32, i32) {
    %c0_i32 = arith.constant 0 : i32
    %c0_i32_0 = arith.constant 0 : i32
    %c0_i32_1 = arith.constant 0 : i32
    return %c0_i32, %c0_i32_0 : i32, i32
  }
  func.func @transform_5(%arg0: i32) -> (i32, i32) {
    %c0_i32 = arith.constant 0 : i32
    %c0_i32_0 = arith.constant 0 : i32
    %c0_i32_1 = arith.constant 0 : i32
    return %c0_i32, %c0_i32_0 : i32, i32
  }
}

</mosaic_0001>

<bundles_post_ra>
// kernel: tpu_custom_call.1
= control target key start
LH: loop header
LB: loop body
LE: loop exit
PB: predicated region body
PF: predicated region fallthrough
CT: control target
= control target key end

     0   :  { %10 = vsyncpa [#allocation5], 0  ;;  %s883_s0 = inlined_call_operand.vmem [shape: f32[16,32], index: 0, kind: input, shape index: {}]   ;;  %s884_s1 = inlined_call_operand.hbm [shape: f32[16,32], index: 1, kind: input, shape index: {}]   ;;  %s885_s2 = inlined_call_operand.vmem [shape: f32[16,1], index: 2, kind: input, shape index: {}]   ;;  %s886_s3 = inlined_call_operand.hbm [shape: f32[16,128], index: 3, kind: input, shape index: {}]   ;;  %s887_s4 = inlined_call_operand.vmem [shape: f32[16,128], index: 4, kind: input, shape index: {}]   ;;  %s888_s5 = inlined_call_operand.hbm [shape: f32[1,128], index: 5, kind: output, shape index: {}]  }
   0x1   :  { %12 = vsyncpa [#allocation5 + $0x1], 0 }
   0x2   :  { %13 = vsyncpa [#allocation8], 0 }
   0x3   :  { %14 = vsyncpa [#allocation6], 0  ;;  %s708_s18 = smov 0   ;;  %s710_s19 = smov 0  }
   0x4   :  { %s712_s20 = smov 0   ;;  %s714_s21 = smov 0  }
   0x5 LB: > { %s727_s22 = sadd.s32 4294967295, %s668_s21   ;;  %p66_p0 = scmp.ne.s32.totalorder %s660_s19, %s656_s18  ;;  %s668_s21 = sphi %s714_s21, %s905_s21   ;;  %s664_s20 = sphi %s712_s20, %s904_s20   ;;  %s660_s19 = sphi %s710_s19, %s903_s19   ;;  %s656_s18 = sphi %s708_s18, %s902_s18  }
   0x6   : > { %p889_p1 = scmp.eq.s32.totalorder %s727_s22, 0  ;;  %p456_p2 = scmp.ge.s32.totalorder %s668_s21, 1 }
   0x7   : > { %p166_p3 = scmp.lt.s32.totalorder %s668_s21, 3  ;;  %s670_s25 = smov [#allocation7]  }
   0x8   : > { %p736_p5 = por %p889_p1, %p66_p0  ;;  %s178_s26 = sshll.u32 %s670_s25, 4  ;;  %s179_s26 = int_to_ptr.vmem [resolvable:$true] %s178_s26 }
   0x9   : > { %p740_p6 = pnand %p456_p2, %p166_p3  ;;  %s753_s28 = sadd.s32 1, %s668_s21  }
   0xa   : > { %s892_s23 = scalar_select %p736_p5, 1, 0 }
   0xb   : > { %s893_s24 = scalar_select %p740_p6, 1, 0 }
   0xc   : > { %p486_p7 = pneg %p740_p6  ;;  %s53_s29 = sadd.s32 1, %s664_s20 }
   0xd   : > { %s50_s30 = ssub.s32 %s668_s21, %s753_s28  ;;  %s542_s8 = scalar_lea.hbm %s886_s3, 256 }
   0xe   : > { %p748_p8 = pnand %p486_p7, %p889_p1  ;;  %p543_p9 = scmp.ne.s32.totalorder %s886_s3, %s542_s8 }
   0xf   : > { %p549_p13 = scmp.lt.u32.totalorder %s542_s8, %s886_s3 }
  0x10   : > { %p544_p10 = pneg %p748_p8 }
  0x12   : > { %p545_p11 = pnand %p544_p10, %p543_p9 }
  0x14   : > { %p546_p12 = pneg %p545_p11 }
  0x16   : > { %p551_p0 = pnand %p549_p13, %p546_p12 }
  0x18   : > { %554 = shalt.err (!%p551_p0)
}
  0x19   : > { %s555_s13 = scalar_lea.vmem %s179_s26, 256  ;;  %p563_p4 = scmp.lt.s32.totalorder %s179_s26, %s179_s26 }
  0x1a   : > { %p556_p2 = scmp.ne.s32.totalorder %s179_s26, %s555_s13  ;;  %p564_p1 = scmp.lt.s32.totalorder %s555_s13, %s555_s13 }
  0x1c   : > { %p558_p3 = pnand %p556_p2, %p544_p10  ;;  %p565_p5 = por %p564_p1, %p563_p4 }
  0x1e   : > { %p559_p7 = pneg %p558_p3 }
  0x20   : > { %p566_p6 = pnand %p565_p5, %p559_p7 }
  0x22   : > { %569 = shalt.err (!%p566_p6)
}
  0x23   : > { %s671_s14 = smov 128   ;;  %s672_s15 = smov 8  }
  0x24   : > { %489 = dma.hbm_to_vmem [thread:$0]  (!%p748_p8), %s886_s3, 256, %s179_s26, [#allocation8], %s671_s14, %s671_s14, %s672_s15  }
  0x25   : > { %p51_p9 = scmp.eq.s32.totalorder %s50_s30, 0  ;;  %p60_p10 = scmp.ne.s32.totalorder %s664_s20, %s660_s19 }
  0x26   : > { %p61_p1 = scmp.eq.s32.totalorder %s668_s21, 0  ;;  %p495_p4 = scmp.lt.s32.totalorder %s668_s21, 2 }
  0x27   : > { %s779_s18 = scalar_select %p51_p9, %s664_s20, %s53_s29  }
  0x28   : > { %p62_p5 = por %p61_p1, %p60_p10  ;;  %s202_s25 = sand.u32 1, %s664_s20  }
  0x29   : > { %s459_s6 = sshll.u32 %s202_s25, 3  ;;  %s460_s7 = sshll.u32 %s668_s21, 7 }
  0x2a   : > { %s786_s10 = scalar_lea.hbm %s884_s1, %s460_s7  ;;  %s206_s26 = scalar_lea.vmem [#allocation4], %s459_s6 }
  0x2b   : > { %s213_s27 = sshll.u32 %s206_s26, 4  ;;  %p790_p6 = pnand %p495_p4, %p62_p5  ;;  %s788_s27 = int_to_ptr.vmem [resolvable:$true] %s213_s27 }
  0x2c   : > { %s203_s21 = scalar_lea.sflag [#allocation5], %s202_s25  ;;  %s570_s30 = scalar_lea.hbm %s786_s10, 128 }
  0x2d   : > { %p571_p8 = scmp.ne.s32.totalorder %s786_s10, %s570_s30  ;;  %p572_p11 = pneg %p790_p6 }
  0x2e   : > { %s575_s13 = scalar_lea.hbm %s884_s1, 256  ;;  %p576_p0 = scmp.lt.u32.totalorder %s786_s10, %s884_s1 }
  0x2f   : > { %p573_p12 = pnand %p572_p11, %p571_p8  ;;  %p577_p2 = scmp.lt.u32.totalorder %s575_s13, %s570_s30 }
  0x30   : > { %p579_p7 = scmp.lt.u32.totalorder %s570_s30, %s786_s10 }
  0x31   : > { %p574_p13 = pneg %p573_p12  ;;  %p578_p3 = por %p577_p2, %p576_p0 }
  0x33   : > { %p580_p9 = por %p579_p7, %p578_p3 }
  0x35   : > { %p581_p10 = pnand %p580_p9, %p574_p13 }
  0x37   : > { %584 = shalt.err (!%p581_p10)
}
  0x38   : > { %s585_s16 = scalar_lea.vmem %s788_s27, 128  ;;  %s673_s17 = smov [#allocation4]  }
  0x39   : > { %p586_p1 = scmp.ne.s32.totalorder %s788_s27, %s585_s16  ;;  %s590_s25 = sshll.u32 %s673_s17, 4  ;;  %s591_s25 = int_to_ptr.vmem [resolvable:$false] %s590_s25 }
  0x3a   : > { %s592_s6 = scalar_lea.vmem %s591_s25, 256  ;;  %p593_p8 = scmp.lt.s32.totalorder %s788_s27, %s591_s25 }
  0x3b   : > { %p588_p4 = pnand %p586_p1, %p572_p11  ;;  %p594_p12 = scmp.lt.s32.totalorder %s592_s6, %s585_s16 }
  0x3d   : > { %p589_p5 = pneg %p588_p4  ;;  %p595_p0 = por %p594_p12, %p593_p8 }
  0x3f   : > { %p596_p2 = pnand %p595_p0, %p589_p5 }
  0x41   : > { %599 = shalt.err (!%p596_p2)
}
  0x42   : > { %493 = dma.hbm_to_vmem [thread:$0]  (!%p790_p6), %s786_s10, 128, %s788_s27, %s203_s21  }
  0x43   : > { %p896_p13 = scmp.ne.s32.totalorder %s893_s24, 0 }
  0x44   : > { %s231_s7 = sand.u32 (!%p896_p13), 1, %s660_s19   ;;  %p897_p11 = scmp.ne.s32.totalorder (!%p896_p13), %s892_s23, 0 }
  0x45   : > { %229 = sbr.rel (%p896_p13) target bundleno = 610 (0x262), region = 40  ;;  %s462_s8 = sshll.u32 (!%p896_p13), %s231_s7, 3 }
  0x46   : > { %s232_s9 = scalar_lea.sflag (!%p896_p13), [#allocation5], %s231_s7  ;;  %s235_s26 = scalar_lea.vmem (!%p896_p13), [#allocation4], %s462_s8 }
  0x4c   : > { %643 = dma.done.wait (%p897_p11), %s232_s9, 128  }
  0x4d   : > { %645 = vsyncadd (%p897_p11), %s232_s9, 4294967168  ;;  %p898_p3 = scmp.eq.s32.totalorder %s727_s22, 0 }
  0x4f   : > { %647 = dma.done.wait (%p898_p3), [#allocation8], 256   ;;  %p899_p7 = pmov %p898_p3 }
  0x50   : > { %p269_p6 = scmp.lt.s32.totalorder %s727_s22, 1  ;;  %p900_p9 = scmp.ne.s32.totalorder %s727_s22, 0 }
  0x51   : > { %649 = vsyncadd (%p899_p7), [#allocation8], 4294967040  ;;  %vm281_vm0 = vcmask (!%p900_p9), 0   ;;  %v674_v0 = vmov (!%p900_p9), 0.0  }
  0x52   : > { %s270_s24 = scalar_select %p269_p6, %s727_s22, 1 }
  0x53   : > { %280 = sbr.rel (%p900_p9) target bundleno = 90 (0x5a), region = 52  ;;  %282 = vst.msk [vmem:[#allocation2] sm:$0x1] (!%p900_p9), %vm281_vm0, %v674_v0  ;;  %283 = vst.msk [vmem:[#allocation3] sm:$0x1] (!%p900_p9), %vm281_vm0, %v674_v0 }
  0x54   : > { %s464_s10 = sshll.u32 %s270_s24, 3 }
  0x55   : > { %s272_s21 = scalar_lea.vmem %s883_s0, %s464_s10  ;;  %s276_s23 = scalar_lea.vmem %s885_s2, %s464_s10 }
  0x5a PF: > { %v286_v1 = vld [vmem:[%s276_s23] sm:$0xff]  ;;  %vm313_vm1 = vcmask 7168   ;;  %v675_v2 = vmov 0   ;;  %vm296_vm2 = vcmask 261120   ;;  %vm310_vm3 = vcmask 0   ;;  %p467_p10 = scmp.ne.s32.totalorder %s727_s22, 1 }
  0x5b   : > { %538 = vset.pattern.permute.xlu0 %v675_v2  ;;  %v314_v3 = vsel %vm313_vm1, %v286_v1, 0.0  ;;  %v284_v4 = vld [vmem:[%s272_s21] sm:$0xff]  ;;  %v676_v33 = vmov (!%p467_p10), 0   ;;  %v331_v37 = vld [vmem:[#allocation7] sm:$0xff] (!%p467_p10)  ;;  %v334_v40 = vld [vmem:[%s887_s4 + $0x8] sm:$0xff] (!%p467_p10)  ;;  %v358_v52 = vlaneseq (!%p467_p10) }
  0x5c   : > { %292 = vperm.xlu0 %538, %v286_v1   ;;  %315 = vadd.xlane.f32.xlu1 %v314_v3  ;;  %v285_v5 = vld [vmem:[%s235_s26] sm:$0xff]  ;;  %v312_v25 = vld [vmem:[#allocation3] sm:$0x1]  ;;  %v288_v26 = vld [vmem:[#allocation2] sm:$0x1] }
  0x5d   : > { %v287_v6 = vsub.f32 %v284_v4, %v285_v5  ;;  %v332_v38 = vld [vmem:[#allocation7 + $0x8] sm:$0xff] (!%p467_p10)  ;;  %v359_v54 = vshrl.u32 (!%p467_p10), %v358_v52, 7 }
  0x5e   : > { %v333_v39 = vld [vmem:[%s887_s4] sm:$0xff] (!%p467_p10)  ;;  %v336_v42 = vmul.f32 (!%p467_p10), %v334_v40, %v332_v38 }
  0x5f   : > { %v289_v7 = vmul.f32 %v287_v6, %v287_v6  ;;  %v335_v41 = vmul.f32 (!%p467_p10), %v333_v39, %v331_v37  ;;  %v360_v56 = vsub.s32 (!%p467_p10), 0, %v359_v54 }
  0x60   : > { %539 = vset.pattern.permute.xlu0 (!%p467_p10), %v676_v33  ;;  %v338_v44 = vsub.f32 (!%p467_p10), %v336_v42, %v332_v38 }
  0x61   : > { %v337_v43 = vsub.f32 (!%p467_p10), %v335_v41, %v331_v37 }
  0x62   : > { %v340_v46 = vmul.f32 (!%p467_p10), %v338_v44, %v338_v44 }
  0x63   : > { %v339_v45 = vmul.f32 (!%p467_p10), %v337_v43, %v337_v43 }
  0x65   : > { %v341_v47 = vadd.f32 (!%p467_p10), %v340_v46, %v339_v45 }
  0x67   : > { %v342_v48 = vrot.slane (!%p467_p10), %v341_v47, 4 }
  0x69   : > { %v343_v49 = vadd.f32 (!%p467_p10), %v342_v48, %v341_v47 }
  0x6b   : > { %v344_v50 = vrot.slane (!%p467_p10), %v343_v49, 2 }
  0x6d   : > { %v345_v51 = vadd.f32 (!%p467_p10), %v344_v50, %v343_v49 }
  0x6f   : > { %v346_v53 = vrot.slane (!%p467_p10), %v345_v51, 1 }
  0x71   : > { %v347_v55 = vadd.f32 (!%p467_p10), %v346_v53, %v345_v51 }
  0x73   : > { %v348_v57 = vmul.f32 (!%p467_p10), 0.0625, %v347_v55 }
  0xdb   : > { %v293_v8 = vpop.permute.xlu0 %292 }
  0xdc   : > { %v295_v9 = vmul.f32 %v293_v8, %v289_v7 }
  0xde   : > { %v297_v10 = vsel %vm296_vm2, %v295_v9, 0.0 }
  0xdf   : > { %298 = vadd.xlane.f32.xlu0 %v297_v10 }
  0xe9   : > { %v316_v11 = vpop.xlane.xlu1 %315 }
  0xea   : > { %v317_v12 = vrot.slane %v316_v11, 4 }
  0xec   : > { %v318_v13 = vadd.f32 %v317_v12, %v316_v11 }
  0xee   : > { %v319_v14 = vrot.slane %v318_v13, 2 }
  0xf0   : > { %v320_v18 = vadd.f32 %v319_v14, %v318_v13 }
  0xf2   : > { %v321_v21 = vrot.slane %v320_v18, 1 }
  0xf4   : > { %v322_v24 = vadd.f32 %v321_v21, %v320_v18 }
 0x16c   : > { %v299_v15 = vpop.xlane.xlu0 %298 }
 0x16d   : > { %v300_v16 = vrot.slane %v299_v15, 4 }
 0x16f   : > { %v301_v17 = vadd.f32 %v300_v16, %v299_v15 }
 0x171   : > { %v302_v19 = vrot.slane %v301_v17, 2 }
 0x173   : > { %v303_v20 = vadd.f32 %v302_v19, %v301_v17 }
 0x175   : > { %v304_v22 = vrot.slane %v303_v20, 1 }
 0x177   : > { %v305_v23 = vadd.f32 %v304_v22, %v303_v20 }
 0x179   : > { %472 = vpush %v305_v23 }
 0x17a   : > { %474 = vpush %v322_v24 }
 0x1aa   : > { %s473_s12 = spop %472  ;;  %330 = sbr.rel (%p467_p10) target bundleno = 585 (0x249), region = 56 }
 0x1ab   : > { %v307_v27 = vstv %s473_s12  ;;  %s475_s13 = spop %474 }
 0x1ac   : > { %v308_v28 = vmul.f32 0.03125, %v307_v27  ;;  %v324_v29 = vstv %s475_s13 }
 0x1ad   : > { %v325_v30 = vadd.f32 %v324_v29, %v312_v25 }
 0x1ae   : > { %v309_v31 = vadd.f32 %v308_v28, %v288_v26 }
 0x1af   : > { %326 = vst.msk [vmem:[#allocation3] sm:$0x1] %vm310_vm3, %v325_v30 }
 0x1b0   : > { %311 = vst.msk [vmem:[#allocation2] sm:$0x1] %vm310_vm3, %v309_v31 }
 0x1b6   : > { %v350_v32 = vld [vmem:[#allocation3] sm:$0x1] }
 0x1b7   : > { %540 = vrcp.f32 %v350_v32  ;;  %v349_v34 = vld [vmem:[#allocation2] sm:$0x1] }
 0x1c1   : > { %v541_v35 = vpop.eup %540 }
 0x1c2   : > { %v352_v36 = vmul.f32 %v541_v35, %v349_v34 }
 0x1c4   : > { %355 = vperm.xlu0 %539, %v352_v36  }
 0x243   : > { %v356_v58 = vpop.permute.xlu0 %355 }
 0x244   : > { %v361_v59 = vrot.slane %v356_v58, %v360_v56 }
 0x246   : > { %v362_v60 = vadd.f32 %v361_v59, %v348_v57 }
 0x248   : > { %363 = vst [vmem:[#allocation9] sm:$0x1] %v362_v60 }
 0x249 PF: > { %p497_p1 = scmp.eq.s32.totalorder %s727_s22, 1  ;;  %s677_s25 = smov [#allocation9]  }
 0x24a   : > { %s371_s6 = sshll.u32 %s677_s25, 4  ;;  %s372_s6 = int_to_ptr.vmem [resolvable:$true] %s371_s6 }
 0x24b   : > { %s600_s7 = scalar_lea.vmem %s372_s6, 16  ;;  %s606_s8 = scalar_lea.vmem %s372_s6, 32 }
 0x24c   : > { %p601_p4 = scmp.ne.s32.totalorder %s372_s6, %s600_s7  ;;  %p607_p12 = scmp.lt.s32.totalorder %s372_s6, %s372_s6 }
 0x24d   : > { %p608_p0 = scmp.lt.s32.totalorder %s606_s8, %s600_s7 }
 0x24e   : > { %p602_p5 = pnand %p601_p4, %p497_p1 }
 0x24f   : > { %p609_p2 = por %p608_p0, %p607_p12 }
 0x250   : > { %p603_p8 = pneg %p602_p5 }
 0x252   : > { %p610_p13 = pnand %p609_p2, %p603_p8 }
 0x254   : > { %613 = shalt.err (!%p610_p13)
}
 0x255   : > { %s614_s24 = scalar_lea.hbm %s888_s5, 16 }
 0x256   : > { %p615_p11 = scmp.ne.s32.totalorder %s888_s5, %s614_s24  ;;  %p620_p6 = scmp.lt.u32.totalorder %s614_s24, %s888_s5 }
 0x258   : > { %p616_p3 = pnand %p615_p11, %p497_p1 }
 0x25a   : > { %p617_p7 = pneg %p616_p3 }
 0x25c   : > { %p622_p9 = pnand %p620_p6, %p617_p7 }
 0x25e   : > { %625 = shalt.err (!%p622_p9)
}
 0x25f   : > { %483 = dma.vmem_to_hbm [thread:$0]  (%p497_p1), %s372_s6, 16, %s888_s5, [#allocation6]  }
 0x260   : > { %651 = dma.done.wait (%p497_p1), [#allocation6], 16  }
 0x261   : > { %653 = vsyncadd (%p497_p1), [#allocation6], 4294967280 }
 0x262 PF: > { %s901_s23 = smov %s779_s18  ;;  %p17_p10 = scmp.ge.s32.totalorder %s753_s28, 4  }
 0x263   : > { %s902_s18 = smov %s660_s19  ;;  %s903_s19 = smov %s664_s20 }
 0x264   : > { %s904_s20 = smov %s901_s23  ;;  %s905_s21 = smov %s753_s28 }
 0x265   :  { %19 = sbr.rel (!%p17_p10) target bundleno = 5 (0x5), region = 95 }
 0x26c   :  { %384 = vsyncpa [#allocation5], 1 }
 0x26d   :  { %386 = vsyncpa [#allocation5 + $0x1], 1 }
 0x26e   :  { %387 = vsyncpa [#allocation8], 1 }
 0x26f   :  { %388 = vsyncpa [#allocation6], 1 }
 0x270   :  { %390 = vsyncpa [#allocation6 + $0x1], 1 }

</bundles_post_ra>
